<compile_context>
chip_gen: v6e
topology: v6e:2x2x1
jax: 0.10.0
libtpu: 0.0.40
codegen_flags: <defaults>
</compile_context>

<pallas_src>
import functools
import math

import jax
import jax.numpy as jnp
from jax.experimental import pallas as pl
from jax.experimental.pallas import tpu as pltpu

_SELU_ALPHA = 1.6732632423543772
_SELU_SCALE = 1.0507009873554805

_SUBLANE = {4: 8, 2: 16, 1: 32}      # min sublane multiple per itemsize
_VMEM_LIMIT = 32 << 20               # explicit scoped-VMEM limit (safe v5e..v7x)
_BLOCK_BUDGET = 4 << 20              # ~4 MiB/block -> ~16 MiB of double buffers


def _round_up(x, m):
    return ((x + m - 1) // m) * m


def _select_tiles(rows, cols, itemsize, r_mult):
    """Pick (tile_r, tile_c) obeying the (sublane,128) rule and a VMEM budget."""
    # Lane-dense col tile (multiple of 128) whenever possible, else full cols.
    tile_c = min(cols, 4096) if cols % 128 == 0 else cols
    # TODO(synk): pathological case of huge cols that is NOT a multiple of 128
    # (full-cols block may exceed the VMEM budget); not hit for typical shapes.
    if rows <= r_mult:
        return rows, tile_c                       # full-dim row block (legal)
    cap = max(r_mult, (_BLOCK_BUDGET // (tile_c * itemsize)) // r_mult * r_mult)
    tile_r = min(cap, _round_up(rows, r_mult))
    # v7x megacore: if everything would be a single block, split rows in two so
    # both TensorCores get work (harmless on v5e/v6e).
    if tile_r >= rows and tile_c >= cols and rows >= 2 * r_mult:
        tile_r = _round_up(-(-rows // 2), r_mult)
    return tile_r, tile_c


def _flat_2d_shape(total):
    """Lane-dense 2-D view of the fully-flattened array, or None."""
    if total % 128 != 0:
        return None
    cols = 128
    while cols * 2 <= 8192 and total % (cols * 2) == 0:
        cols *= 2
    return (total // cols, cols)


def _ew_kernel(relu_type):
    """Element-wise kernel specialized at trace time on the static relu_type."""
    def kernel(x_ref, o_ref):
        x = x_ref[...]
        if relu_type == 'relu':
            o_ref[...] = jnp.maximum(x, 0).astype(o_ref.dtype)
        elif relu_type == 'leakyrelu':
            xf = x.astype(jnp.float32)            # f32 in-register (v5e-safe)
            o_ref[...] = jnp.where(xf > 0.0, xf, 0.2 * xf).astype(o_ref.dtype)
        elif relu_type == 'selu':
            xf = x.astype(jnp.float32)
            y = _SELU_SCALE * jnp.where(xf > 0.0, xf, _SELU_ALPHA * jnp.expm1(xf))
            o_ref[...] = y.astype(o_ref.dtype)
        else:
            raise ValueError(f'Relu type {relu_type} not support.')
    return kernel


def _prelu_kernel(rep):
    """PReLU kernel; w_ref is a resident (C, 1) block, rep = tile_r // C."""
    def kernel(w_ref, x_ref, o_ref):
        xf = x_ref[...].astype(jnp.float32)
        w = w_ref[...].astype(jnp.float32)        # (C, 1)
        slope = jnp.tile(w, (rep, 1))             # (tile_r, 1) per-row slope
        o_ref[...] = jnp.where(xf > 0.0, xf, slope * xf).astype(o_ref.dtype)
    return kernel


@functools.partial(jax.jit, static_argnames=('relu_type',))
def _ew_2d(x2, relu_type):
    rows, cols = x2.shape
    itemsize = jnp.dtype(x2.dtype).itemsize
    sub = _SUBLANE.get(itemsize, 8)
    tile_r, tile_c = _select_tiles(rows, cols, itemsize, sub)
    grid = (pl.cdiv(rows, tile_r), pl.cdiv(cols, tile_c))
    return pl.pallas_call(
        _ew_kernel(relu_type),
        out_shape=jax.ShapeDtypeStruct((rows, cols), x2.dtype),
        grid=grid,
        in_specs=[pl.BlockSpec((tile_r, tile_c), lambda i, j: (i, j))],
        out_specs=pl.BlockSpec((tile_r, tile_c), lambda i, j: (i, j)),
        compiler_params=pltpu.CompilerParams(
            dimension_semantics=("parallel", "parallel"),
            vmem_limit_bytes=_VMEM_LIMIT),
    )(x2)


@functools.partial(jax.jit, static_argnames=('channels',))
def _prelu_2d(x2, w, channels):
    rows, cols = x2.shape                          # rows = N * C
    itemsize = jnp.dtype(x2.dtype).itemsize
    sub = _SUBLANE.get(itemsize, 8)
    # tile_r must be a multiple of C so `local_row % C` is the channel index.
    r_mult = sub * channels // math.gcd(sub, channels)
    tile_r, tile_c = _select_tiles(rows, cols, itemsize, r_mult)
    grid = (pl.cdiv(rows, tile_r), pl.cdiv(cols, tile_c))
    return pl.pallas_call(
        _prelu_kernel(tile_r // channels),
        out_shape=jax.ShapeDtypeStruct((rows, cols), x2.dtype),
        grid=grid,
        in_specs=[
            pl.BlockSpec((channels, 1), lambda i, j: (0, 0)),   # resident slopes
            pl.BlockSpec((tile_r, tile_c), lambda i, j: (i, j)),
        ],
        out_specs=pl.BlockSpec((tile_r, tile_c), lambda i, j: (i, j)),
        compiler_params=pltpu.CompilerParams(
            dimension_semantics=("parallel", "parallel"),
            vmem_limit_bytes=_VMEM_LIMIT),
    )(w, x2)


@functools.partial(jax.jit, static_argnames=('relu_type',))
def relu_layer_forward(x_nchw, relu_type='relu', prelu_weight=None):
    """Forward of ReluLayer.

    x_nchw:       (N, C, H, W), any float dtype (kept end-to-end)
    relu_type:    'relu' | 'leakyrelu' | 'prelu' | 'selu' | 'none'
    prelu_weight: (C,) per-channel slope (only used for 'prelu'; default 0.25).
    """
    relu_type = relu_type.lower()
    if relu_type not in ('relu', 'leakyrelu', 'prelu', 'selu', 'none'):
        raise ValueError(f'Relu type {relu_type} not support.')
    if relu_type == 'none':
        return x_nchw                              # identity: no kernel, no HBM pass

    N, C, H, W = x_nchw.shape
    if relu_type == 'prelu':
        if prelu_weight is None:
            prelu_weight = jnp.full((C,), 0.25, jnp.float32)   # nn.PReLU default
        w = jnp.asarray(prelu_weight, jnp.float32).reshape(C, 1)
        out2 = _prelu_2d(x_nchw.reshape(N * C, H * W), w, channels=C)
        return out2.reshape(N, C, H, W)

    # Channel-independent variants: fully flatten to a lane-dense slab if possible.
    shape2 = _flat_2d_shape(x_nchw.size) or (N * C, H * W)
    out2 = _ew_2d(x_nchw.reshape(shape2), relu_type=relu_type)
    return out2.reshape(N, C, H, W)


# -----------------------------------------------------------------------------
# Reference (pure jnp) for correctness checks.
# -----------------------------------------------------------------------------
def _reference(x, relu_type, prelu_weight=None):
    relu_type = relu_type.lower()
    if relu_type == 'relu':
        return jnp.maximum(x, 0.0)
    if relu_type == 'leakyrelu':
        return jnp.where(x > 0, x, 0.2 * x)
    if relu_type == 'prelu':
        w = prelu_weight.reshape(1, -1, 1, 1)
        return jnp.where(x > 0, x, w * x)
    if relu_type == 'selu':
        return jax.nn.selu(x)
    return x


if __name__ == "__main__":
    # Small shapes consistent with the module: batch=2, channels=4, spatial=16.
    N, C, H, W = 2, 4, 16, 16

    key = jax.random.PRNGKey(0)
    kx, kw = jax.random.split(key)
    x = jax.random.normal(kx, (N, C, H, W), dtype=jnp.float32)
    prelu_w = 0.25 + 0.05 * jax.random.normal(kw, (C,), dtype=jnp.float32)

    ok = True
    for relu_type in ('relu', 'leakyrelu', 'prelu', 'selu', 'none'):
        out = relu_layer_forward(x, relu_type=relu_type, prelu_weight=prelu_w)
        out = jax.block_until_ready(out)
        ref = _reference(x, relu_type, prelu_weight=prelu_w)
        assert out.shape == (N, C, H, W), (relu_type, out.shape)
        assert out.dtype == x.dtype, (relu_type, out.dtype)
        err = float(jnp.max(jnp.abs(out.astype(jnp.float32)
                                    - ref.astype(jnp.float32))))
        if err > 1e-5 or not bool(jnp.all(jnp.isfinite(out))):
            ok = False
            print(f"MISMATCH {relu_type}: max abs err {err}")

    if ok:
        print("KERNEL_OK")
</pallas_src>

<mosaic_0001>
module attributes {stable_mosaic.version = 11 : i64} {
  func.func @kernel(%arg0: i32, %arg1: i32, %arg2: memref<1x2048xf32, #tpu.memory_space<vmem>>, %arg3: memref<1x2048xf32, #tpu.memory_space<vmem>>) attributes {dimension_semantics = [#tpu.dimension_semantics<parallel>, #tpu.dimension_semantics<parallel>], iteration_bounds = array<i64: 1, 1>, scalar_prefetch = 0 : i64, scratch_operands = 0 : i64, tpu.core_type = #tpu.core_type<tc>, window_params = [{transform_indices = @transform_0, window_bounds = array<i64: 1, 2048>}, {transform_indices = @transform_1, window_bounds = array<i64: 1, 2048>}]} {
    %c0 = arith.constant 0 : index
    %c0_0 = arith.constant 0 : index
    %0 = vector.load %arg2[%c0, %c0_0] : memref<1x2048xf32, #tpu.memory_space<vmem>>, vector<1x2048xf32>
    %cst = arith.constant 0.000000e+00 : f32
    %1 = vector.broadcast %cst : f32 to vector<1x2048xf32>
    %2 = arith.maximumf %0, %1 : vector<1x2048xf32>
    %c0_1 = arith.constant 0 : index
    %c0_2 = arith.constant 0 : index
    %3 = vector.load %arg3[%c0_1, %c0_2] : memref<1x2048xf32, #tpu.memory_space<vmem>>, vector<1x2048xf32>
    tpu.vector_store %arg3[%c0_1, %c0_2], %2 {strides = array<i32>} : memref<1x2048xf32, #tpu.memory_space<vmem>>, vector<1x2048xf32>,
    return
  }
  func.func @transform_0(%arg0: i32, %arg1: i32) -> (i32, i32) {
    %c0_i32 = arith.constant 0 : i32
    return %arg0, %arg1 : i32, i32
  }
  func.func @transform_1(%arg0: i32, %arg1: i32) -> (i32, i32) {
    %c0_i32 = arith.constant 0 : i32
    return %arg0, %arg1 : i32, i32
  }
}

</mosaic_0001>

<bundles_post_ra>
// kernel: _ew_2d.1
= control target key start
LH: loop header
LB: loop body
LE: loop exit
PB: predicated region body
PF: predicated region fallthrough
CT: control target
= control target key end

     0   :  { %6 = vsyncpa [#allocation3], 0  ;;  %s106_s0 = inlined_call_operand.hbm [shape: f32[1,2048], index: 0, kind: input, shape index: {}]   ;;  %s107_s1 = inlined_call_operand.hbm [shape: f32[1,2048], index: 1, kind: output, shape index: {}]  }
   0x1   :  { %7 = vsyncpa [#allocation4], 0  ;;  %s88_s6 = smov [#allocation2]  }
   0x2   :  { %s14_s7 = sshll.u32 %s88_s6, 4  ;;  %s15_s7 = int_to_ptr.vmem [resolvable:$true] %s14_s7 }
   0x3   :  { %s52_s8 = scalar_lea.vmem %s15_s7, 256  ;;  %p57_p1 = scmp.lt.s32.totalorder %s15_s7, %s15_s7 }
   0x4   :  { %p53_p0 = scmp.ne.s32.totalorder %s15_s7, %s52_s8  ;;  %p58_p2 = scmp.lt.s32.totalorder %s52_s8, %s52_s8 }
   0x6   :  { %p59_p3 = por %p58_p2, %p57_p1 }
   0x8   :  { %p60_p4 = pnand %p59_p3, %p53_p0 }
   0xa   :  { %63 = shalt.err (!%p60_p4)
}
   0xb   :  { %17 = dma.hbm_to_vmem [thread:$0]  %s106_s0, 256, %s15_s7, [#allocation3]  }
   0xc   :  { %84 = dma.done.wait [#allocation3], 256  }
   0xd   :  { %85 = vsyncadd [#allocation3], 4294967040  ;;  %s89_s11 = smov [#allocation5]   ;;  %v21_v0 = vld [vmem:[#allocation2] sm:$0xff]  ;;  %v22_v1 = vld [vmem:[#allocation2 + $0x8] sm:$0xff] }
   0xe   :  { %s33_s12 = sshll.u32 %s89_s11, 4  ;;  %v23_v2 = vmax.f32 %v21_v0, 0.0  ;;  %v24_v3 = vmax.f32 %v22_v1, 0.0  ;;  %s34_s12 = int_to_ptr.vmem [resolvable:$true] %s33_s12 }
   0xf   :  { %s64_s13 = scalar_lea.vmem %s34_s12, 256  ;;  %p69_p6 = scmp.lt.s32.totalorder %s34_s12, %s34_s12 }
  0x10   :  { %25 = vst [vmem:[#allocation5] sm:$0xff] %v23_v2  ;;  %26 = vst [vmem:[#allocation5 + $0x8] sm:$0xff] %v24_v3  ;;  %p65_p5 = scmp.ne.s32.totalorder %s34_s12, %s64_s13  ;;  %p70_p7 = scmp.lt.s32.totalorder %s64_s13, %s64_s13 }
  0x12   :  { %p71_p8 = por %p70_p7, %p69_p6 }
  0x14   :  { %p72_p9 = pnand %p71_p8, %p65_p5 }
  0x16   :  { %75 = shalt.err (!%p72_p9)
}
  0x17   :  { %36 = dma.vmem_to_hbm [thread:$0]  %s34_s12, 256, %s107_s1, [#allocation4]  }
  0x18   :  { %86 = dma.done.wait [#allocation4], 256  }
  0x19   :  { %87 = vsyncadd [#allocation4], 4294967040 }
  0x1a   :  { %40 = vsyncpa [#allocation3], 1 }
  0x1b   :  { %41 = vsyncpa [#allocation4], 1 }

</bundles_post_ra>
